<compile_context>
chip_gen: v6e
topology: v6e:2x2x1
jax: 0.10.0
libtpu: 0.0.40
codegen_flags: <defaults>
</compile_context>

<pallas_src>
import jax
import jax.numpy as jnp
from jax.experimental import pallas as pl
from jax.experimental.pallas import tpu as pltpu


def _locked_dropout_kernel(mask_ref, x_ref, o_ref):
    # mask_ref: (1, tile_f) — VMEM-resident across the (inner) time axis.
    # x_ref / o_ref: (tile_t, tile_f). Implicit sublane broadcast of the mask.
    o_ref[...] = x_ref[...] * mask_ref[...]


def _round_up(v, q):
    return -(-v // q) * q


def _vmem_capacity_bytes():
    """Physical VMEM of the current chip; conservative fallback = 64 MiB (v7x)."""
    cap = 64 * 1024 * 1024
    try:
        info = pltpu.get_tpu_info()
        cap = int(getattr(info, "vmem_capacity_bytes", cap)) or cap
    except Exception:
        pass
    return cap


def _pick_tile_t(T, row_bytes, budget_bytes, quantum):
    """tile_t that is a multiple of `quantum` (or == T), fits the block budget,
    and keeps >=4 grid steps when T is large enough to benefit from pipelining."""
    max_rows = max(1, budget_bytes // max(1, row_bytes))
    if max_rows >= T:
        tile = T
    else:
        tile = max(quantum, (max_rows // quantum) * quantum)
    if tile >= T and T >= 4 * quantum:
        # Split into ~4 blocks so read/compute/writeback overlap and the
        # "parallel" axis can shard across TensorCores.
        tile = _round_up(-(-T // 4), quantum)
    return min(tile, T)


def locked_dropout(x, drop_ratio, key, training=True):
    """x: (T, B, H). Applies a single (1, B, H) dropout mask shared across T."""
    if (not training) or (not drop_ratio):
        return x
    keep_prob = 1.0 - float(drop_ratio)
    if keep_prob <= 0.0:
        # drop_ratio == 1.0: everything dropped (avoid 1/0 in the scale).
        return jnp.zeros_like(x)

    T, B, H = x.shape
    F = B * H
    itemsize = jnp.dtype(x.dtype).itemsize

    # Mask generated once, pre-scaled by 1/keep_prob, kept in x's dtype.
    keep = jax.random.bernoulli(key, p=keep_prob, shape=(1, F))
    mask = (keep.astype(jnp.float32) * jnp.float32(1.0 / keep_prob)).astype(x.dtype)

    x2 = x.reshape(T, F)

    # Generation-aware budgets: ~16 MiB blocks on v5e/v6e (128 MiB VMEM),
    # ~8 MiB on v7x (64 MiB VMEM).
    vmem_cap = _vmem_capacity_bytes()
    block_budget = min(16 * 1024 * 1024, max(2 * 1024 * 1024, vmem_cap // 8))

    quantum = max(8, 32 // itemsize)  # sublane quantum: 8 f32, 16 bf16, 32 int8

    # Feature-axis tiling only when even a minimum-height block with the full
    # feature dim exceeds the budget (very large B*H).
    if F * itemsize * quantum <= block_budget:
        tile_f = F
    else:
        tile_f = max(128, min(F, (block_budget // (quantum * itemsize)) // 128 * 128))

    tile_t = _pick_tile_t(T, tile_f * itemsize, block_budget, quantum)

    grid = (pl.cdiv(F, tile_f), pl.cdiv(T, tile_t))  # T innermost -> mask reuse

    block_bytes = tile_t * tile_f * itemsize
    mask_block_bytes = tile_f * itemsize
    # Double-buffered x-in + out blocks, double-buffered mask, + headroom for
    # Mosaic internal scratch; never exceed physical VMEM.
    vmem_limit = min(vmem_cap, 4 * block_bytes + 2 * mask_block_bytes + (4 << 20))

    cost = pl.CostEstimate(
        flops=T * F,
        transcendentals=0,
        bytes_accessed=2 * T * F * itemsize + F * itemsize,
    )

    y2 = pl.pallas_call(
        _locked_dropout_kernel,
        out_shape=jax.ShapeDtypeStruct((T, F), x.dtype),
        grid=grid,
        in_specs=[
            pl.BlockSpec((1, tile_f), lambda f, t: (0, f)),        # mask (resident over t)
            pl.BlockSpec((tile_t, tile_f), lambda f, t: (t, f)),   # x tile
        ],
        out_specs=pl.BlockSpec((tile_t, tile_f), lambda f, t: (t, f)),
        compiler_params=pltpu.CompilerParams(
            dimension_semantics=("parallel", "parallel"),
            vmem_limit_bytes=int(vmem_limit),
        ),
        cost_estimate=cost,
    )(mask, x2)

    return y2.reshape(T, B, H)


if __name__ == "__main__":
    key = jax.random.PRNGKey(0)
    key_x, key_mask = jax.random.split(key)

    T, B, H = 8, 4, 32
    x = jax.random.normal(key_x, (T, B, H), dtype=jnp.float32)
    drop_ratio = 0.25

    y = locked_dropout(x, drop_ratio, key_mask, training=True)
    y = jax.block_until_ready(y)

    keep_prob = 1.0 - drop_ratio
    scaled = x / keep_prob
    # 1) each element is either 0 or x / keep_prob
    ok_vals = jnp.all(
        jnp.isclose(y, 0.0, atol=1e-6) | jnp.isclose(y, scaled, rtol=1e-5, atol=1e-6)
    )
    # 2) mask is locked across the time dimension
    mask_per_t = jnp.where(jnp.abs(x) > 1e-6, y / jnp.where(x == 0, 1.0, x), 0.0)
    locked = jnp.all(
        jnp.isclose(mask_per_t, mask_per_t[0:1], rtol=1e-4, atol=1e-4)
        | (jnp.abs(x) <= 1e-6)
    )
    # 3) eval mode / zero ratio passthrough
    passthrough = jnp.array_equal(
        locked_dropout(x, 0.0, key_mask, training=True), x
    ) and jnp.array_equal(
        locked_dropout(x, drop_ratio, key_mask, training=False), x
    )
    # 4) drop_ratio == 1.0 produces all zeros (no divide-by-zero)
    all_dropped = jnp.array_equal(
        locked_dropout(x, 1.0, key_mask, training=True), jnp.zeros_like(x)
    )

    assert bool(ok_vals), "values are not {0, x/keep_prob}"
    assert bool(locked), "mask differs across time steps"
    assert bool(passthrough), "eval / zero-ratio path should be identity"
    assert bool(all_dropped), "drop_ratio=1.0 should zero the output"
    print("KERNEL_OK")
</pallas_src>

<mosaic_0001>
module attributes {stable_mosaic.version = 11 : i64} {
  func.func @_locked_dropout_kernel(%arg0: i32, %arg1: i32, %arg2: memref<1x128xf32, #tpu.memory_space<vmem>>, %arg3: memref<8x128xf32, #tpu.memory_space<vmem>>, %arg4: memref<8x128xf32, #tpu.memory_space<vmem>>) attributes {dimension_semantics = [#tpu.dimension_semantics<parallel>, #tpu.dimension_semantics<parallel>], iteration_bounds = array<i64: 1, 1>, scalar_prefetch = 0 : i64, scratch_operands = 0 : i64, tpu.core_type = #tpu.core_type<tc>, window_params = [{transform_indices = @transform_0, window_bounds = array<i64: 1, 128>}, {transform_indices = @transform_1, window_bounds = array<i64: 8, 128>}, {transform_indices = @transform_2, window_bounds = array<i64: 8, 128>}]} {
    %c0 = arith.constant 0 : index
    %c0_0 = arith.constant 0 : index
    %0 = vector.load %arg3[%c0, %c0_0] : memref<8x128xf32, #tpu.memory_space<vmem>>, vector<8x128xf32>
    %c0_1 = arith.constant 0 : index
    %c0_2 = arith.constant 0 : index
    %1 = vector.load %arg2[%c0_1, %c0_2] : memref<1x128xf32, #tpu.memory_space<vmem>>, vector<1x128xf32>
    %2 = vector.broadcast %1 : vector<1x128xf32> to vector<8x128xf32>
    %3 = arith.mulf %0, %2 : vector<8x128xf32>
    %c0_3 = arith.constant 0 : index
    %c0_4 = arith.constant 0 : index
    %4 = vector.load %arg4[%c0_3, %c0_4] : memref<8x128xf32, #tpu.memory_space<vmem>>, vector<8x128xf32>
    tpu.vector_store %arg4[%c0_3, %c0_4], %3 {strides = array<i32>} : memref<8x128xf32, #tpu.memory_space<vmem>>, vector<8x128xf32>,
    return
  }
  func.func @transform_0(%arg0: i32, %arg1: i32) -> (i32, i32) {
    %c0_i32 = arith.constant 0 : i32
    %c0_i32_0 = arith.constant 0 : i32
    return %c0_i32, %arg0 : i32, i32
  }
  func.func @transform_1(%arg0: i32, %arg1: i32) -> (i32, i32) {
    %c0_i32 = arith.constant 0 : i32
    return %arg1, %arg0 : i32, i32
  }
  func.func @transform_2(%arg0: i32, %arg1: i32) -> (i32, i32) {
    %c0_i32 = arith.constant 0 : i32
    return %arg1, %arg0 : i32, i32
  }
}

</mosaic_0001>

<bundles_post_ra>
// kernel: tpu_custom_call.1
= control target key start
LH: loop header
LB: loop body
LE: loop exit
PB: predicated region body
PF: predicated region fallthrough
CT: control target
= control target key end

     0   :  { %7 = vsyncpa [#allocation3], 0  ;;  %s159_s0 = inlined_call_operand.hbm [shape: f32[1,128], index: 0, kind: input, shape index: {}]   ;;  %s160_s1 = inlined_call_operand.hbm [shape: f32[8,128], index: 1, kind: input, shape index: {}]   ;;  %s161_s2 = inlined_call_operand.hbm [shape: f32[8,128], index: 2, kind: output, shape index: {}]  }
   0x1   :  { %8 = vsyncpa [#allocation6], 0 }
   0x2   :  { %9 = vsyncpa [#allocation4], 0  ;;  %s132_s9 = smov [#allocation2]   ;;  %s133_s11 = smov [#allocation5]  }
   0x3   :  { %s16_s10 = sshll.u32 %s132_s9, 4  ;;  %s26_s12 = sshll.u32 %s133_s11, 4  ;;  %s17_s10 = int_to_ptr.vmem [resolvable:$true] %s16_s10  ;;  %s27_s12 = int_to_ptr.vmem [resolvable:$true] %s26_s12 }
   0x4   :  { %s74_s13 = scalar_lea.vmem %s17_s10, 16  ;;  %s78_s14 = scalar_lea.vmem %s17_s10, 32 }
   0x5   :  { %p75_p0 = scmp.ne.s32.totalorder %s17_s10, %s74_s13  ;;  %p79_p1 = scmp.lt.s32.totalorder %s17_s10, %s17_s10 }
   0x6   :  { %p80_p2 = scmp.lt.s32.totalorder %s78_s14, %s74_s13 }
   0x8   :  { %p81_p3 = por %p80_p2, %p79_p1 }
   0xa   :  { %p82_p4 = pnand %p81_p3, %p75_p0 }
   0xc   :  { %85 = shalt.err (!%p82_p4)
}
   0xd   :  { %19 = dma.hbm_to_vmem [thread:$0]  %s159_s0, 16, %s17_s10, [#allocation3]  }
   0xe   :  { %s94_s17 = scalar_lea.vmem %s27_s12, 128  ;;  %p99_p6 = scmp.lt.s32.totalorder %s27_s12, %s27_s12 }
   0xf   :  { %p95_p5 = scmp.ne.s32.totalorder %s27_s12, %s94_s17  ;;  %p100_p7 = scmp.lt.s32.totalorder %s94_s17, %s94_s17 }
  0x11   :  { %p101_p8 = por %p100_p7, %p99_p6 }
  0x13   :  { %p102_p9 = pnand %p101_p8, %p95_p5 }
  0x15   :  { %105 = shalt.err (!%p102_p9)
}
  0x16   :  { %29 = dma.hbm_to_vmem [thread:$0]  %s160_s1, 128, %s27_s12, [#allocation6]  }
  0x17   :  { %126 = dma.done.wait [#allocation3], 16  }
  0x18   :  { %127 = vsyncadd [#allocation3], 4294967280 }
  0x19   :  { %128 = dma.done.wait [#allocation6], 128  }
  0x1a   :  { %129 = vsyncadd [#allocation6], 4294967168  ;;  %s134_s20 = smov [#allocation7]   ;;  %v36_v0 = vld [vmem:[#allocation5] sm:$0xff]  ;;  %v62_v1 = vld [vmem:[#allocation2] ss:$0 sm:$0xff] }
  0x1b   :  { %s52_s21 = sshll.u32 %s134_s20, 4  ;;  %v44_v2 = vmul.f32 %v62_v1, %v36_v0  ;;  %s53_s21 = int_to_ptr.vmem [resolvable:$true] %s52_s21 }
  0x1c   :  { %s106_s0 = scalar_lea.vmem %s53_s21, 128  ;;  %p111_p11 = scmp.lt.s32.totalorder %s53_s21, %s53_s21 }
  0x1d   :  { %45 = vst [vmem:[#allocation7] sm:$0xff] %v44_v2  ;;  %p107_p10 = scmp.ne.s32.totalorder %s53_s21, %s106_s0  ;;  %p112_p12 = scmp.lt.s32.totalorder %s106_s0, %s106_s0 }
  0x1f   :  { %p113_p13 = por %p112_p12, %p111_p11 }
  0x21   :  { %p114_p0 = pnand %p113_p13, %p107_p10 }
  0x23   :  { %117 = shalt.err (!%p114_p0)
}
  0x24   :  { %55 = dma.vmem_to_hbm [thread:$0]  %s53_s21, 128, %s161_s2, [#allocation4]  }
  0x25   :  { %130 = dma.done.wait [#allocation4], 128  }
  0x26   :  { %131 = vsyncadd [#allocation4], 4294967168 }
  0x27   :  { %59 = vsyncpa [#allocation3], 1 }
  0x28   :  { %60 = vsyncpa [#allocation6], 1 }
  0x29   :  { %61 = vsyncpa [#allocation4], 1 }

</bundles_post_ra>
